<compile_context>
chip_gen: v5e
topology: v5e:2x2
jax: 0.10.0
libtpu: 0.0.40
codegen_flags: <defaults>
</compile_context>

<pallas_src>
import jax
import jax.numpy as jnp
from jax.experimental import pallas as pl
from jax.experimental.pallas import tpu as pltpu


def _affine_kernel(w_ref, b_ref, x_ref, o_ref):
    # w_ref, b_ref: (1, 1) float32 scalars in SMEM; x_ref/o_ref: VMEM tiles.
    w = w_ref[0, 0]
    b = b_ref[0, 0]
    y = w * x_ref[...].astype(jnp.float32) + b   # params kept in f32 (like torch)
    o_ref[...] = y.astype(o_ref.dtype)


def _target_block_bytes():
    """Per-generation input-block size for this HBM-streaming kernel."""
    try:
        kind = jax.devices()[0].device_kind.lower()
    except Exception:
        kind = ""
    if "v7" in kind:
        return 8 << 20   # ~3.2 TB/s HBM/TC: amortize ~0.35us/step overhead
    if "v5" in kind:
        return 2 << 20   # tighter default scoped VMEM; 2 MiB already ~roofline
    return 4 << 20       # v6e / default


def example_lr_model(x, w, b):
    """Compute w * x + b elementwise with a Pallas TPU kernel.

    x: arbitrary-shape float array.
    w, b: scalar parameters (python floats or 0-d arrays).
    """
    orig_shape = x.shape
    dtype = x.dtype
    flat = x.reshape(-1)
    n = flat.shape[0]

    lane = 128
    # Pad only the ragged tail to a full lane row (<= 127 elements); we never
    # pad up to a full tile, the grid's masked last block handles that.
    rem = n % lane
    if rem:
        flat = jnp.pad(flat, (0, lane - rem))
    rows = flat.shape[0] // lane
    x2d = flat.reshape(rows, lane)

    itemsize = jnp.dtype(dtype).itemsize
    # Sublane packing minimum: 8 for 4-byte, 16 for bf16, 32 for int8.
    pack = max(8, 32 // max(1, itemsize))

    # Pick tile_rows so one block is a multi-MiB DMA (but never bigger than
    # the whole array rounded up to the packing multiple).
    target_rows = _target_block_bytes() // (lane * itemsize)
    target_rows = max(pack, (target_rows // pack) * pack)
    rows_ceil = -(-rows // pack) * pack
    tile_rows = min(target_rows, rows_ceil)

    # On large inputs keep >= 2 grid steps so the "parallel" axis can shard
    # across the 2 TensorCores of a v7x chip (cost is one extra ~0.35us step).
    total_bytes = rows_ceil * lane * itemsize
    if total_bytes >= (4 << 20):
        half_rows = -(-rows_ceil // (2 * pack)) * pack
        tile_rows = min(tile_rows, half_rows)

    grid = (pl.cdiv(rows, tile_rows),)

    # Double-buffered input + output blocks must fit scoped VMEM.
    block_bytes = tile_rows * lane * itemsize
    vmem_limit = max(32 << 20, 4 * block_bytes + (2 << 20))

    w_arr = jnp.asarray(w, dtype=jnp.float32).reshape(1, 1)
    b_arr = jnp.asarray(b, dtype=jnp.float32).reshape(1, 1)

    out2d = pl.pallas_call(
        _affine_kernel,
        out_shape=jax.ShapeDtypeStruct((rows, lane), dtype),
        grid_spec=pltpu.PrefetchScalarGridSpec(
            num_scalar_prefetch=0,
            grid=grid,
            in_specs=[
                pl.BlockSpec(memory_space=pltpu.SMEM),   # w (1,1) f32
                pl.BlockSpec(memory_space=pltpu.SMEM),   # b (1,1) f32
                pl.BlockSpec((tile_rows, lane), lambda i: (i, 0)),
            ],
            out_specs=pl.BlockSpec((tile_rows, lane), lambda i: (i, 0)),
        ),
        compiler_params=pltpu.CompilerParams(
            dimension_semantics=("parallel",),
            vmem_limit_bytes=vmem_limit,
        ),
    )(w_arr, b_arr, x2d)

    out = out2d.reshape(-1)
    if rem:
        out = out[:n]
    return out.reshape(orig_shape)


if __name__ == "__main__":
    key = jax.random.PRNGKey(0)
    # Small example input consistent with an elementwise model.
    x = jax.random.normal(key, (2, 4, 16, 16), dtype=jnp.float32)

    # Deterministic parameters matching ExampleLRModel.__init__:
    #   w = -10.0, b = 0.0
    w = jnp.float32(-10.0)
    b = jnp.float32(0.0)

    y = example_lr_model(x, w, b)
    jax.block_until_ready(y)

    # Reference check in plain JAX.
    y_ref = w * x + b
    assert y.shape == x.shape
    assert y.dtype == x.dtype
    assert jnp.allclose(y, y_ref, atol=1e-6, rtol=1e-6)

    print("KERNEL_OK")
</pallas_src>

<mosaic_0001>
module attributes {stable_mosaic.version = 11 : i64} {
  func.func @_affine_kernel(%arg0: i32, %arg1: memref<1x1xf32, #tpu.memory_space<smem>>, %arg2: memref<1x1xf32, #tpu.memory_space<smem>>, %arg3: memref<16x128xf32, #tpu.memory_space<vmem>>, %arg4: memref<16x128xf32, #tpu.memory_space<vmem>>) attributes {dimension_semantics = [#tpu.dimension_semantics<parallel>], iteration_bounds = array<i64: 1>, scalar_prefetch = 0 : i64, scratch_operands = 0 : i64, tpu.core_type = #tpu.core_type<tc>, window_params = [{transform_indices = @transform_0, window_bounds = array<i64: 1, 1>}, {transform_indices = @transform_1, window_bounds = array<i64: 1, 1>}, {transform_indices = @transform_2, window_bounds = array<i64: 16, 128>}, {transform_indices = @transform_3, window_bounds = array<i64: 16, 128>}]} {
    %c0 = arith.constant 0 : index
    %c0_0 = arith.constant 0 : index
    %0 = memref.load %arg1[%c0, %c0_0] : memref<1x1xf32, #tpu.memory_space<smem>>
    %c0_1 = arith.constant 0 : index
    %c0_2 = arith.constant 0 : index
    %1 = memref.load %arg2[%c0_1, %c0_2] : memref<1x1xf32, #tpu.memory_space<smem>>
    %c0_3 = arith.constant 0 : index
    %c0_4 = arith.constant 0 : index
    %2 = vector.load %arg3[%c0_3, %c0_4] : memref<16x128xf32, #tpu.memory_space<vmem>>, vector<16x128xf32>
    %3 = vector.broadcast %0 : f32 to vector<16x128xf32>
    %4 = arith.mulf %3, %2 : vector<16x128xf32>
    %5 = vector.broadcast %1 : f32 to vector<16x128xf32>
    %6 = arith.addf %4, %5 : vector<16x128xf32>
    %c0_5 = arith.constant 0 : index
    %c0_6 = arith.constant 0 : index
    %7 = vector.load %arg4[%c0_5, %c0_6] : memref<16x128xf32, #tpu.memory_space<vmem>>, vector<16x128xf32>
    tpu.vector_store %arg4[%c0_5, %c0_6], %6 {strides = array<i32>} : memref<16x128xf32, #tpu.memory_space<vmem>>, vector<16x128xf32>,
    return
  }
  func.func @transform_0(%arg0: i32) -> (i32, i32) {
    %c0_i32 = arith.constant 0 : i32
    %c0_i32_0 = arith.constant 0 : i32
    %c0_i32_1 = arith.constant 0 : i32
    return %c0_i32, %c0_i32_0 : i32, i32
  }
  func.func @transform_1(%arg0: i32) -> (i32, i32) {
    %c0_i32 = arith.constant 0 : i32
    %c0_i32_0 = arith.constant 0 : i32
    %c0_i32_1 = arith.constant 0 : i32
    return %c0_i32, %c0_i32_0 : i32, i32
  }
  func.func @transform_2(%arg0: i32) -> (i32, i32) {
    %c0_i32 = arith.constant 0 : i32
    %c0_i32_0 = arith.constant 0 : i32
    return %arg0, %c0_i32 : i32, i32
  }
  func.func @transform_3(%arg0: i32) -> (i32, i32) {
    %c0_i32 = arith.constant 0 : i32
    %c0_i32_0 = arith.constant 0 : i32
    return %arg0, %c0_i32 : i32, i32
  }
}

</mosaic_0001>

<bundles_post_ra>
// kernel: tpu_custom_call.1
= control target key start
LH: loop header
LB: loop body
LE: loop exit
PB: predicated region body
PF: predicated region fallthrough
CT: control target
= control target key end

     0   :  { %10 = vsyncpa [#allocation5], 0  ;;  %s156_s0 = inlined_call_operand.<no memory space> [shape: f32[1,1], index: 0, kind: input, shape index: {}]   ;;  %s157_s1 = inlined_call_operand.<no memory space> [shape: f32[1,1], index: 1, kind: input, shape index: {}]   ;;  %s158_s2 = inlined_call_operand.hbm [shape: f32[16,128], index: 2, kind: input, shape index: {}]   ;;  %s159_s3 = inlined_call_operand.hbm [shape: f32[16,128], index: 3, kind: output, shape index: {}]  }
   0x1   :  { %11 = vsyncpa [#allocation6], 0  ;;  %s20_s14 = sshll.u32 %s158_s2, 4  ;;  %s120_s15 = smov [#allocation4]   ;;  %s21_s14 = int_to_ptr.hbm [resolvable:$true] %s20_s14 }
   0x2   :  { %s22_s16 = sshll.u32 %s120_s15, 4  ;;  %s121_s17 = smov 128   ;;  %s23_s16 = int_to_ptr.vmem [resolvable:$true] %s22_s16 }
   0x3   :  { %s122_s18 = smov 8  }
   0x4   :  { %28 = dma.hbm_to_vmem [thread:$0]  %s21_s14, 256, %s23_s16, [#allocation5], %s121_s17, %s121_s17, %s122_s18  }
   0x5   :  { %116 = dma.done.wait [#allocation5], 256  }
   0x6   :  { %117 = vsyncadd [#allocation5], 4294967040  ;;  %v37_v0 = vstv %s156_s0  ;;  %v35_v1 = vld [vmem:[#allocation4] sm:$0xff]  ;;  %v40_v2 = vstv %s157_s1  ;;  %v36_v3 = vld [vmem:[#allocation4 + $0x8] sm:$0xff]  ;;  %s123_s2 = smov [#allocation7]   ;;  %s51_s26 = sshll.u32 %s159_s3, 4  ;;  %s52_s26 = int_to_ptr.hbm [resolvable:$true] %s51_s26 }
   0x7   :  { %v38_v4 = vmul.f32 %v37_v0, %v35_v1  ;;  %v39_v5 = vmul.f32 %v37_v0, %v36_v3  ;;  %s49_s23 = sshll.u32 %s123_s2, 4  ;;  %s50_s23 = int_to_ptr.vmem [resolvable:$true] %s49_s23 }
   0x9   :  { %v41_v6 = vadd.f32 %v40_v2, %v38_v4  ;;  %v42_v7 = vadd.f32 %v40_v2, %v39_v5 }
   0xb   :  { %43 = vst [vmem:[#allocation7] sm:$0xff] %v41_v6 }
   0xc   :  { %44 = vst [vmem:[#allocation7 + $0x8] sm:$0xff] %v42_v7 }
   0xd   :  { %57 = dma.vmem_to_hbm [thread:$0]  %s50_s23, 256, %s52_s26, [#allocation6], %s121_s17, %s121_s17, %s122_s18  }
   0xe   :  { %118 = dma.done.wait [#allocation6], 256  }
   0xf   :  { %119 = vsyncadd [#allocation6], 4294967040 }
  0x10   :  { %62 = vsyncpa [#allocation5], 1 }
  0x11   :  { %63 = vsyncpa [#allocation6], 1 }

</bundles_post_ra>
